<compile_context>
chip_gen: v5e
topology: v5e:2x2
jax: 0.10.0
libtpu: 0.0.40
codegen_flags: <defaults>
</compile_context>

<pallas_src>
import jax
import jax.numpy as jnp
from jax.experimental import pallas as pl
from jax.experimental.pallas import tpu as pltpu


def _round_up(n, m):
    return ((n + m - 1) // m) * m


def _pad2(a, shape):
    return jnp.pad(a, [(0, t - s) for s, t in zip(a.shape, shape)])


def mlp_kernel(x_ref, w1_ref, b1_ref, w2_ref, b2_ref, w3_ref, b3_ref, o_ref):
    # In-kernel bf16 cast of the f32 activation tile (feeds the MXU).
    x = x_ref[...].astype(jnp.bfloat16)
    # Layer 1: bf16 matmul on MXU, f32 accumulate; bias + ReLU in f32 on VPU
    # (v5e has no bf16 VPU/EUP, so elementwise stays f32).
    h1 = jnp.dot(x, w1_ref[...], preferred_element_type=jnp.float32)
    h1 = jnp.maximum(h1 + b1_ref[...], 0.0)
    # Layer 2
    h2 = jnp.dot(h1.astype(jnp.bfloat16), w2_ref[...],
                 preferred_element_type=jnp.float32)
    h2 = jnp.maximum(h2 + b2_ref[...], 0.0)
    # Layer 3 (no activation)
    h3 = jnp.dot(h2.astype(jnp.bfloat16), w3_ref[...],
                 preferred_element_type=jnp.float32)
    o_ref[...] = (h3 + b3_ref[...]).astype(o_ref.dtype)


def prepare_params(params):
    """One-time prep: pad hidden / num_classes to lane-dense (x128) dims and
    cast weights to bf16. Call once, reuse across forward calls."""
    w1, b1 = params["w1"], params["b1"]
    w2, b2 = params["w2"], params["b2"]
    w3, b3 = params["w3"], params["b3"]

    d_in, hidden = w1.shape
    n_cls = w3.shape[1]
    hid_p = _round_up(hidden, 128)
    cls_p = _round_up(n_cls, 128)

    prepped = {
        # K dim of layer 1 (d_in) is left unpadded; output dims padded to 128.
        "w1": _pad2(w1, (d_in, hid_p)).astype(jnp.bfloat16),
        "b1": _pad2(b1.reshape(1, -1), (1, hid_p)).astype(jnp.float32),
        "w2": _pad2(w2, (hid_p, hid_p)).astype(jnp.bfloat16),
        "b2": _pad2(b2.reshape(1, -1), (1, hid_p)).astype(jnp.float32),
        "w3": _pad2(w3, (hid_p, cls_p)).astype(jnp.bfloat16),
        "b3": _pad2(b3.reshape(1, -1), (1, cls_p)).astype(jnp.float32),
        "d_in": int(d_in),
        "n_cls": int(n_cls),
    }
    return prepped


def _pick_tile_b(B, tile_b):
    """Small batches: one tile padded to the 16-row sublane minimum.
    Large batches: 256-row tiles (fills v6e/v7x 256-wide MXU, >=2 grid steps)."""
    if tile_b is None:
        tile_b = max(16, _round_up(B, 16)) if B <= 256 else 256
    b_p = _round_up(B, tile_b)
    return tile_b, b_p


def neural_net_forward(x, prepped, *, tile_b=None):
    """x: [B, input_size] f32. prepped: output of prepare_params (padded bf16 weights)."""
    w1, b1 = prepped["w1"], prepped["b1"]
    w2, b2 = prepped["w2"], prepped["b2"]
    w3, b3 = prepped["w3"], prepped["b3"]
    n_cls = prepped["n_cls"]

    B, d_in = x.shape
    assert d_in == prepped["d_in"]
    hid_p = w1.shape[1]
    cls_p = w3.shape[1]

    tile_b, b_p = _pick_tile_b(B, tile_b)

    # Only the batch dim may need (cheap) padding; feature dim stays as-is and
    # x stays f32 in HBM (cast to bf16 happens inside the kernel).
    x_p = x if b_p == B else jnp.pad(x, ((0, b_p - B), (0, 0)))

    # Weights/biases resident across all batch tiles (same block every step).
    resident = lambda a: pl.BlockSpec(a.shape, lambda i: (0, 0))

    out_p = pl.pallas_call(
        mlp_kernel,
        out_shape=jax.ShapeDtypeStruct((b_p, cls_p), jnp.float32),
        grid=(b_p // tile_b,),
        in_specs=[
            pl.BlockSpec((tile_b, d_in), lambda i: (i, 0)),  # x tile, f32
            resident(w1), resident(b1),
            resident(w2), resident(b2),
            resident(w3), resident(b3),
        ],
        out_specs=pl.BlockSpec((tile_b, cls_p), lambda i: (i, 0)),
        compiler_params=pltpu.CompilerParams(
            dimension_semantics=("parallel",),  # independent batch tiles -> megacore
        ),
    )(x_p, w1, b1, w2, b2, w3, b3)

    return out_p[:B, :n_cls]


def init_params(key, input_size, hidden_size, num_classes):
    """Deterministic init; mimics nn.Linear's U(-1/sqrt(fan_in), 1/sqrt(fan_in))."""
    ks = jax.random.split(key, 6)

    def linear(kw, kb, fan_in, fan_out):
        bound = 1.0 / jnp.sqrt(fan_in)
        w = jax.random.uniform(kw, (fan_in, fan_out), jnp.float32, -bound, bound)
        b = jax.random.uniform(kb, (1, fan_out), jnp.float32, -bound, bound)
        return w, b

    w1, b1 = linear(ks[0], ks[1], input_size, hidden_size)
    w2, b2 = linear(ks[2], ks[3], hidden_size, hidden_size)
    w3, b3 = linear(ks[4], ks[5], hidden_size, num_classes)
    return {"w1": w1, "b1": b1, "w2": w2, "b2": b2, "w3": w3, "b3": b3}


def _ref_forward_f32(x, params):
    h = jnp.maximum(x @ params["w1"] + params["b1"], 0.0)
    h = jnp.maximum(h @ params["w2"] + params["b2"], 0.0)
    return h @ params["w3"] + params["b3"]


def _ref_forward_bf16(x, params):
    """Reference emulating the kernel's bf16-MXU / f32-accumulate math."""
    xb = x.astype(jnp.bfloat16)
    w1b = params["w1"].astype(jnp.bfloat16)
    w2b = params["w2"].astype(jnp.bfloat16)
    w3b = params["w3"].astype(jnp.bfloat16)
    h = jnp.maximum(jnp.dot(xb, w1b, preferred_element_type=jnp.float32)
                    + params["b1"], 0.0)
    h = jnp.maximum(jnp.dot(h.astype(jnp.bfloat16), w2b,
                            preferred_element_type=jnp.float32) + params["b2"], 0.0)
    return jnp.dot(h.astype(jnp.bfloat16), w3b,
                   preferred_element_type=jnp.float32) + params["b3"]


if __name__ == "__main__":
    key = jax.random.PRNGKey(0)
    input_size, hidden_size, num_classes = 64, 32, 8
    batch = 8

    kx, kp, kx2 = jax.random.split(key, 3)
    x = jax.random.normal(kx, (batch, input_size), dtype=jnp.float32)
    params = init_params(kp, input_size, hidden_size, num_classes)

    # One-time parameter prep (padding + bf16 cast hoisted out of the call path).
    prepped = prepare_params(params)

    out = neural_net_forward(x, prepped)
    jax.block_until_ready(out)
    assert out.shape == (batch, num_classes)

    # Tight check vs. bf16-in / f32-accum reference.
    assert jnp.allclose(out, _ref_forward_bf16(x, params), atol=1e-3, rtol=1e-3)
    # Loose check vs. pure-f32 PyTorch-equivalent forward (bf16 rounding only).
    assert jnp.allclose(out, _ref_forward_f32(x, params), atol=2e-2, rtol=2e-2)

    # Second check: multi-step batch grid with resident weights (grid > 1).
    x2 = jax.random.normal(kx2, (40, input_size), dtype=jnp.float32)
    out2 = neural_net_forward(x2, prepped, tile_b=16)   # 40 -> padded 48 -> 3 tiles
    jax.block_until_ready(out2)
    assert out2.shape == (40, num_classes)
    assert jnp.allclose(out2, _ref_forward_f32(x2, params), atol=2e-2, rtol=2e-2)

    print("KERNEL_OK")
</pallas_src>

<mosaic_0001>
module attributes {stable_mosaic.version = 11 : i64} {
  func.func @mlp_kernel(%arg0: i32, %arg1: memref<16x64xf32, #tpu.memory_space<vmem>>, %arg2: memref<64x128xbf16, #tpu.memory_space<vmem>>, %arg3: memref<1x128xf32, #tpu.memory_space<vmem>>, %arg4: memref<128x128xbf16, #tpu.memory_space<vmem>>, %arg5: memref<1x128xf32, #tpu.memory_space<vmem>>, %arg6: memref<128x128xbf16, #tpu.memory_space<vmem>>, %arg7: memref<1x128xf32, #tpu.memory_space<vmem>>, %arg8: memref<16x128xf32, #tpu.memory_space<vmem>>) attributes {dimension_semantics = [#tpu.dimension_semantics<parallel>], iteration_bounds = array<i64: 1>, scalar_prefetch = 0 : i64, scratch_operands = 0 : i64, tpu.core_type = #tpu.core_type<tc>, window_params = [{transform_indices = @transform_0, window_bounds = array<i64: 16, 64>}, {pipeline_mode = #tpu.pipeline_mode<synchronous>, transform_indices = @transform_1, window_bounds = array<i64: 64, 128>}, {pipeline_mode = #tpu.pipeline_mode<synchronous>, transform_indices = @transform_2, window_bounds = array<i64: 1, 128>}, {pipeline_mode = #tpu.pipeline_mode<synchronous>, transform_indices = @transform_3, window_bounds = array<i64: 128, 128>}, {pipeline_mode = #tpu.pipeline_mode<synchronous>, transform_indices = @transform_4, window_bounds = array<i64: 1, 128>}, {pipeline_mode = #tpu.pipeline_mode<synchronous>, transform_indices = @transform_5, window_bounds = array<i64: 128, 128>}, {pipeline_mode = #tpu.pipeline_mode<synchronous>, transform_indices = @transform_6, window_bounds = array<i64: 1, 128>}, {transform_indices = @transform_7, window_bounds = array<i64: 16, 128>}]} {
    %c0 = arith.constant 0 : index
    %c0_0 = arith.constant 0 : index
    %0 = vector.load %arg1[%c0, %c0_0] : memref<16x64xf32, #tpu.memory_space<vmem>>, vector<16x64xf32>
    %1 = arith.truncf %0 : vector<16x64xf32> to vector<16x64xbf16>
    %c0_1 = arith.constant 0 : index
    %c0_2 = arith.constant 0 : index
    %2 = vector.load %arg2[%c0_1, %c0_2] : memref<64x128xbf16, #tpu.memory_space<vmem>>, vector<64x128xbf16>
    %cst = arith.constant dense<0.000000e+00> : vector<16x128xf32>
    %3 = tpu.matmul %1, %2, %cst {dimension_numbers = #tpu.dot_dimension_numbers<[1], [0], [0], [1], [0, 0, 1, 1], [], []>} : vector<16x64xbf16>, vector<64x128xbf16>, vector<16x128xf32> -> vector<16x128xf32>
    %c0_3 = arith.constant 0 : index
    %c0_4 = arith.constant 0 : index
    %4 = vector.load %arg3[%c0_3, %c0_4] : memref<1x128xf32, #tpu.memory_space<vmem>>, vector<1x128xf32>
    %5 = vector.broadcast %4 : vector<1x128xf32> to vector<16x128xf32>
    %6 = arith.addf %3, %5 : vector<16x128xf32>
    %cst_5 = arith.constant 0.000000e+00 : f32
    %7 = vector.broadcast %cst_5 : f32 to vector<16x128xf32>
    %8 = arith.maximumf %6, %7 : vector<16x128xf32>
    %9 = arith.truncf %8 : vector<16x128xf32> to vector<16x128xbf16>
    %c0_6 = arith.constant 0 : index
    %c0_7 = arith.constant 0 : index
    %10 = vector.load %arg4[%c0_6, %c0_7] : memref<128x128xbf16, #tpu.memory_space<vmem>>, vector<128x128xbf16>
    %cst_8 = arith.constant dense<0.000000e+00> : vector<16x128xf32>
    %11 = tpu.matmul %9, %10, %cst_8 {dimension_numbers = #tpu.dot_dimension_numbers<[1], [0], [0], [1], [0, 0, 1, 1], [], []>} : vector<16x128xbf16>, vector<128x128xbf16>, vector<16x128xf32> -> vector<16x128xf32>
    %c0_9 = arith.constant 0 : index
    %c0_10 = arith.constant 0 : index
    %12 = vector.load %arg5[%c0_9, %c0_10] : memref<1x128xf32, #tpu.memory_space<vmem>>, vector<1x128xf32>
    %13 = vector.broadcast %12 : vector<1x128xf32> to vector<16x128xf32>
    %14 = arith.addf %11, %13 : vector<16x128xf32>
    %cst_11 = arith.constant 0.000000e+00 : f32
    %15 = vector.broadcast %cst_11 : f32 to vector<16x128xf32>
    %16 = arith.maximumf %14, %15 : vector<16x128xf32>
    %17 = arith.truncf %16 : vector<16x128xf32> to vector<16x128xbf16>
    %c0_12 = arith.constant 0 : index
    %c0_13 = arith.constant 0 : index
    %18 = vector.load %arg6[%c0_12, %c0_13] : memref<128x128xbf16, #tpu.memory_space<vmem>>, vector<128x128xbf16>
    %cst_14 = arith.constant dense<0.000000e+00> : vector<16x128xf32>
    %19 = tpu.matmul %17, %18, %cst_14 {dimension_numbers = #tpu.dot_dimension_numbers<[1], [0], [0], [1], [0, 0, 1, 1], [], []>} : vector<16x128xbf16>, vector<128x128xbf16>, vector<16x128xf32> -> vector<16x128xf32>
    %c0_15 = arith.constant 0 : index
    %c0_16 = arith.constant 0 : index
    %20 = vector.load %arg7[%c0_15, %c0_16] : memref<1x128xf32, #tpu.memory_space<vmem>>, vector<1x128xf32>
    %21 = vector.broadcast %20 : vector<1x128xf32> to vector<16x128xf32>
    %22 = arith.addf %19, %21 : vector<16x128xf32>
    %c0_17 = arith.constant 0 : index
    %c0_18 = arith.constant 0 : index
    %23 = vector.load %arg8[%c0_17, %c0_18] : memref<16x128xf32, #tpu.memory_space<vmem>>, vector<16x128xf32>
    tpu.vector_store %arg8[%c0_17, %c0_18], %22 {strides = array<i32>} : memref<16x128xf32, #tpu.memory_space<vmem>>, vector<16x128xf32>,
    return
  }
  func.func @transform_0(%arg0: i32) -> (i32, i32) {
    %c0_i32 = arith.constant 0 : i32
    %c0_i32_0 = arith.constant 0 : i32
    return %arg0, %c0_i32 : i32, i32
  }
  func.func @transform_1(%arg0: i32) -> (i32, i32) {
    %c0_i32 = arith.constant 0 : i32
    %c0_i32_0 = arith.constant 0 : i32
    %c0_i32_1 = arith.constant 0 : i32
    return %c0_i32, %c0_i32_0 : i32, i32
  }
  func.func @transform_2(%arg0: i32) -> (i32, i32) {
    %c0_i32 = arith.constant 0 : i32
    %c0_i32_0 = arith.constant 0 : i32
    %c0_i32_1 = arith.constant 0 : i32
    return %c0_i32, %c0_i32_0 : i32, i32
  }
  func.func @transform_3(%arg0: i32) -> (i32, i32) {
    %c0_i32 = arith.constant 0 : i32
    %c0_i32_0 = arith.constant 0 : i32
    %c0_i32_1 = arith.constant 0 : i32
    return %c0_i32, %c0_i32_0 : i32, i32
  }
  func.func @transform_4(%arg0: i32) -> (i32, i32) {
    %c0_i32 = arith.constant 0 : i32
    %c0_i32_0 = arith.constant 0 : i32
    %c0_i32_1 = arith.constant 0 : i32
    return %c0_i32, %c0_i32_0 : i32, i32
  }
  func.func @transform_5(%arg0: i32) -> (i32, i32) {
    %c0_i32 = arith.constant 0 : i32
    %c0_i32_0 = arith.constant 0 : i32
    %c0_i32_1 = arith.constant 0 : i32
    return %c0_i32, %c0_i32_0 : i32, i32
  }
  func.func @transform_6(%arg0: i32) -> (i32, i32) {
    %c0_i32 = arith.constant 0 : i32
    %c0_i32_0 = arith.constant 0 : i32
    %c0_i32_1 = arith.constant 0 : i32
    return %c0_i32, %c0_i32_0 : i32, i32
  }
  func.func @transform_7(%arg0: i32) -> (i32, i32) {
    %c0_i32 = arith.constant 0 : i32
    %c0_i32_0 = arith.constant 0 : i32
    return %arg0, %c0_i32 : i32, i32
  }
}

</mosaic_0001>

<bundles_post_ra>
// kernel: tpu_custom_call.1
= control target key start
LH: loop header
LB: loop body
LE: loop exit
PB: predicated region body
PF: predicated region fallthrough
CT: control target
= control target key end

     0   :  { %12 = vsyncpa [#allocation3], 0  ;;  %s661_s0 = inlined_call_operand.hbm [shape: f32[16,64], index: 0, kind: input, shape index: {}]   ;;  %s662_s1 = inlined_call_operand.hbm [shape: bf16[64,128], index: 1, kind: input, shape index: {}]   ;;  %s663_s2 = inlined_call_operand.vmem [shape: f32[1,128], index: 2, kind: input, shape index: {}]   ;;  %s664_s3 = inlined_call_operand.hbm [shape: bf16[128,128], index: 3, kind: input, shape index: {}]   ;;  %s665_s4 = inlined_call_operand.vmem [shape: f32[1,128], index: 4, kind: input, shape index: {}]   ;;  %s666_s5 = inlined_call_operand.hbm [shape: bf16[128,128], index: 5, kind: input, shape index: {}]   ;;  %s667_s6 = inlined_call_operand.vmem [shape: f32[1,128], index: 6, kind: input, shape index: {}]   ;;  %s668_s7 = inlined_call_operand.hbm [shape: f32[16,128], index: 7, kind: output, shape index: {}]  }
   0x1   :  { %13 = vsyncpa [#allocation6], 0 }
   0x2   :  { %14 = vsyncpa [#allocation9], 0  ;;  %s33_s26 = sshll.u32 %s662_s1, 4  ;;  %s34_s26 = int_to_ptr.hbm [resolvable:$true] %s33_s26 }
   0x3   :  { %15 = vsyncpa [#allocation4], 0  ;;  %s582_s27 = smov [#allocation5]   ;;  %s20_s8 = sshll.u32 %s661_s0, 4  ;;  %s21_s8 = int_to_ptr.hbm [resolvable:$true] %s20_s8 }
   0x4   :  { %s35_s28 = sshll.u32 %s582_s27, 4  ;;  %s583_s9 = smov 64   ;;  %s36_s28 = int_to_ptr.vmem [resolvable:$true] %s35_s28 }
   0x5   :  { %s584_s10 = smov 4   ;;  %s585_s11 = smov [#allocation2]  }
   0x6   :  { %41 = dma.hbm_to_vmem [thread:$0]  %s34_s26, 512, %s36_s28, [#allocation6], %s583_s9, %s583_s9, %s584_s10  }
   0x7   :  { %s22_s12 = sshll.u32 %s585_s11, 4  ;;  %s586_s13 = smov 128   ;;  %s23_s12 = int_to_ptr.vmem [resolvable:$true] %s22_s12 }
   0x8   :  { %s587_s14 = smov 8   ;;  %s48_s16 = sshll.u32 %s664_s3, 4  ;;  %s49_s16 = int_to_ptr.hbm [resolvable:$true] %s48_s16 }
   0x9   :  { %28 = dma.hbm_to_vmem [thread:$0]  %s21_s8, 256, %s23_s12, [#allocation3], %s586_s13, %s586_s13, %s587_s14  }
   0xa   :  { %s588_s17 = smov [#allocation7]   ;;  %s63_s20 = sshll.u32 %s666_s5, 4  ;;  %s64_s20 = int_to_ptr.hbm [resolvable:$true] %s63_s20 }
   0xb   :  { %s50_s0 = sshll.u32 %s588_s17, 4  ;;  %s589_s21 = smov [#allocation8]   ;;  %s51_s0 = int_to_ptr.vmem [resolvable:$true] %s50_s0 }
   0xc   :  { %56 = dma.hbm_to_vmem [thread:$0]  %s49_s16, 1024, %s51_s0, [#allocation6], %s583_s9, %s583_s9, %s584_s10  }
   0xd   :  { %s65_s22 = sshll.u32 %s589_s21, 4  ;;  %s66_s22 = int_to_ptr.vmem [resolvable:$true] %s65_s22 }
   0xe   :  { %71 = dma.hbm_to_vmem [thread:$0]  %s64_s20, 1024, %s66_s22, [#allocation9], %s583_s9, %s583_s9, %s584_s10  }
   0xf   :  { %574 = dma.done.wait [#allocation3], 256  }
  0x10   :  { %575 = vsyncadd [#allocation3], 4294967040 }
  0x11   :  { %576 = dma.done.wait [#allocation6], 1536  }
  0x12   :  { %577 = vsyncadd [#allocation6], 4294965760 }
  0x13   :  { %578 = dma.done.wait [#allocation9], 1024  }
  0x14   :  { %579 = vsyncadd [#allocation9], 4294966272  ;;  %v425_v0 = vld [vmem:[#allocation5 + $0x18] sm:$0xff]  ;;  %v424_v1 = vld [vmem:[#allocation5 + $0x10] sm:$0xff]  ;;  %vm130_vm0 = vcmask 523264   ;;  %s590_s26 = smov [#allocation10]  }
  0x15   :  { %138 = vmatpush.bf16.msra.mxu0 %v425_v0  ;;  %v433_v2 = vld [vmem:[#allocation7 + $0x38] sm:$0xff]  ;;  %v432_v3 = vld [vmem:[#allocation7 + $0x30] sm:$0xff]  ;;  %v423_v4 = vld [vmem:[#allocation5 + $0x8] sm:$0xff]  ;;  %s324_s27 = sshll.u32 %s590_s26, 4  ;;  %s325_s27 = int_to_ptr.vmem [resolvable:$true] %s324_s27 }
  0x16   :  { %219 = vmatpush.bf16.msra.mxu1 %v433_v2  ;;  %v431_v5 = vld [vmem:[#allocation7 + $0x28] sm:$0xff]  ;;  %v422_v6 = vld [vmem:[#allocation5] sm:$0xff]  ;;  %v91_v7 = vld [vmem:[#allocation2] sm:$0xff] }
  0x17   :  { %v92_v8 = vld [vmem:[#allocation2 + $0x8] sm:$0xff]  ;;  %v430_v9 = vld [vmem:[#allocation7 + $0x20] sm:$0xff]  ;;  %v428_v12 = vld [vmem:[#allocation7 + $0x10] sm:$0xff] }
  0x18   :  { %v93_v10 = vpack.c.bf16 %v92_v8, %v91_v7  ;;  %v429_v11 = vld [vmem:[#allocation7 + $0x18] sm:$0xff]  ;;  %v427_v13 = vld [vmem:[#allocation7 + $0x8] sm:$0xff]  ;;  %v426_v14 = vld [vmem:[#allocation7] sm:$0xff] }
  0x19   :  { %139 = vmatpush.bf16.msra.mxu0 %v424_v1  ;;  %v441_v15 = vld [vmem:[#allocation8 + $0x38] sm:$0xff]  ;;  %v440_v16 = vld [vmem:[#allocation8 + $0x30] sm:$0xff]  ;;  %v439_v17 = vld [vmem:[#allocation8 + $0x28] sm:$0xff] }
  0x1a   :  { %220 = vmatpush.bf16.msra.mxu1 %v432_v3  ;;  %304 = vmatpush.bf16.msra.mxu2 %v441_v15  ;;  %v438_v18 = vld [vmem:[#allocation8 + $0x20] sm:$0xff]  ;;  %v451_v20 = vld [vmem:[%s663_s2] ss:$0 sm:$0xff]  ;;  %v437_v27 = vld [vmem:[#allocation8 + $0x18] sm:$0xff] }
  0x1b   :  { %v436_v28 = vld [vmem:[#allocation8 + $0x10] sm:$0xff]  ;;  %v435_v29 = vld [vmem:[#allocation8 + $0x8] sm:$0xff]  ;;  %v434_v30 = vld [vmem:[#allocation8] sm:$0xff] }
  0x1c   :  { %v452_v32 = vld [vmem:[%s665_s4] ss:$0 sm:$0xff]  ;;  %s326_s4 = sshll.u32 %s668_s7, 4  ;;  %s327_s4 = int_to_ptr.hbm [resolvable:$true] %s326_s4 }
  0x1d   :  { %140 = vmatpush.bf16.msra.mxu0 %v423_v4  ;;  %v453_v39 = vld [vmem:[%s667_s6] ss:$0 sm:$0xff] }
  0x1e   :  { %221 = vmatpush.bf16.msra.mxu1 %v431_v5  ;;  %305 = vmatpush.bf16.msra.mxu2 %v440_v16 }
  0x21   :  { %141 = vmatpush.bf16.msra.mxu0 %v422_v6 }
  0x22   :  { %222 = vmatpush.bf16.msra.mxu1 %v430_v9  ;;  %306 = vmatpush.bf16.msra.mxu2 %v439_v17 }
  0x24   :  { %357 = vmatmul.msk.bf16.vlgmr.msra.gmra.mxu0 %vm130_vm0, %v93_v10 }
  0x26   :  { %223 = vmatpush.bf16.msra.mxu1 %v429_v11  ;;  %307 = vmatpush.bf16.msra.mxu2 %v438_v18 }
  0x2a   :  { %224 = vmatpush.bf16.msra.mxu1 %v428_v12  ;;  %308 = vmatpush.bf16.msra.mxu2 %v437_v27 }
  0x2e   :  { %225 = vmatpush.bf16.msra.mxu1 %v427_v13  ;;  %309 = vmatpush.bf16.msra.mxu2 %v436_v28 }
  0x32   :  { %226 = vmatpush.bf16.msra.mxu1 %v426_v14  ;;  %310 = vmatpush.bf16.msra.mxu2 %v435_v29 }
  0x36   :  { %311 = vmatpush.bf16.msra.mxu2 %v434_v30 }
  0xa1   :  { %v143_v19 = vpop.f32.mrf.mxu0 }
  0xa2   :  { %v144_v21 = vadd.f32 %v451_v20, %v143_v19 }
  0xa4   :  { %v148_v24 = vmax.f32 %v144_v21, 0.0 }
  0xa9   :  { %v145_v22 = vpop.f32.mrf.mxu0 }
  0xaa   :  { %v146_v23 = vadd.f32 %v451_v20, %v145_v22 }
  0xac   :  { %v149_v25 = vmax.f32 %v146_v23, 0.0 }
  0xae   :  { %v150_v26 = vpack.c.bf16 %v149_v25, %v148_v24 }
  0xb0   :  { %227 = vmatmul.bf16.vlgmr.msra.gmra.mxu1 %v150_v26 }
 0x12d   :  { %v228_v31 = vpop.f32.mrf.mxu1 }
 0x12e   :  { %v229_v33 = vadd.f32 %v452_v32, %v228_v31 }
 0x130   :  { %v233_v36 = vmax.f32 %v229_v33, 0.0 }
 0x135   :  { %v230_v34 = vpop.f32.mrf.mxu1 }
 0x136   :  { %v231_v35 = vadd.f32 %v452_v32, %v230_v34 }
 0x138   :  { %v234_v37 = vmax.f32 %v231_v35, 0.0 }
 0x13a   :  { %v235_v38 = vpack.c.bf16 %v234_v37, %v233_v36 }
 0x13c   :  { %312 = vmatmul.bf16.vlgmr.msra.gmra.mxu2 %v235_v38 }
 0x1bf   :  { %v313_v40 = vpop.f32.mrf.mxu2 }
 0x1c0   :  { %v314_v41 = vadd.f32 %v453_v39, %v313_v40 }
 0x1c2   :  { %318 = vst [vmem:[#allocation10] sm:$0xff] %v314_v41 }
 0x1c7   :  { %v315_v42 = vpop.f32.mrf.mxu2 }
 0x1c8   :  { %v316_v43 = vadd.f32 %v453_v39, %v315_v42 }
 0x1ca   :  { %319 = vst [vmem:[#allocation10 + $0x8] sm:$0xff] %v316_v43 }
 0x1cb   :  { %332 = dma.vmem_to_hbm [thread:$0]  %s325_s27, 256, %s327_s4, [#allocation4], %s586_s13, %s586_s13, %s587_s14  }
 0x1cc   :  { %580 = dma.done.wait [#allocation4], 256  }
 0x1cd   :  { %581 = vsyncadd [#allocation4], 4294967040 }
 0x1ce   :  { %337 = vsyncpa [#allocation3], 1 }
 0x1cf   :  { %338 = vsyncpa [#allocation6], 1 }
 0x1d0   :  { %339 = vsyncpa [#allocation9], 1 }
 0x1d1   :  { %340 = vsyncpa [#allocation4], 1 }

</bundles_post_ra>
